<compile_context>
chip_gen: v7x
topology: tpu7x:2x2x1
jax: 0.10.0
libtpu: 0.0.40
codegen_flags: <defaults>
</compile_context>

<pallas_src>
import jax
import jax.numpy as jnp
from jax import lax
from jax.experimental import pallas as pl
from jax.experimental.pallas import tpu as pltpu


def _valuenet_kernel(x_ref, w1t_ref, b1t_ref, w2t_ref, b2t_ref, w3c_ref, b3_ref, o_ref):
    # x_ref: (TB, obs_dim) batch-major tile (one contiguous DMA).
    # Layer 1: contract obs_dim of x against the transposed weight so the MXU
    # emits feature-major (H1, TB) output directly (batch on the lane axis).
    h1 = lax.dot_general(
        w1t_ref[...], x_ref[...],
        dimension_numbers=(((1,), (1,)), ((), ())),
        preferred_element_type=jnp.float32,
    )                                                       # (H1, TB)
    h1 = jnp.maximum(h1 + b1t_ref[...], 0.0)                # bias (H1,1) bcast over lanes

    # Layer 2: (H2, H1) @ (H1, TB), f32 accumulation.  If w2t was supplied in
    # bf16 (optional fast path) the activation is cast to match.
    h2 = jnp.dot(w2t_ref[...], h1.astype(w2t_ref.dtype),
                 preferred_element_type=jnp.float32)        # (H2, TB)
    h2 = jnp.maximum(h2 + b2t_ref[...], 0.0)

    # Scalar head: VPU multiply + sublane reduction (keeps the MXU free)
    # + SMEM scalar bias.
    v = jnp.sum(h2 * w3c_ref[...], axis=0, keepdims=True) + b3_ref[0, 0]   # (1, TB)

    o_ref[...] = v.reshape(o_ref.shape).astype(o_ref.dtype)  # lane-dense (1,1,TB) store


def value_net_forward(x, params, *, block_b=None, use_bf16_matmul=False):
    """Fused ValueNet forward pass.

    x: (B, obs_dim) float32
    params: dict with w1 (obs_dim,H1), b1 (1,H1), w2 (H1,H2), b2 (1,H2),
            w3 (H2,1), b3 (1,1)   (torch-Linear weights stored transposed)
    returns: (B, 1) float32
    """
    B, obs_dim = x.shape
    w1, b1 = params["w1"], params["b1"]
    w2, b2 = params["w2"], params["b2"]
    w3, b3 = params["w3"], params["b3"]
    H1, H2 = w1.shape[1], w2.shape[1]

    # Batch tile (lane axis of the kernel).  Per-step VMEM is tiny (~1.1*TB KB
    # + ~130 KB resident weights), so the tile is sized to amortize the
    # ~0.35 us per-step overhead instead: up to 4096 (sweepable 2048-8192),
    # but capped near B/2 so mid/large batches keep >= 2 tiles and the
    # "parallel" axis shards across both v7x TensorCores.  Always a multiple
    # of 128 so output stores stay unmasked lane-dense vst.
    if block_b is None:
        half = pl.cdiv(pl.cdiv(B, 2), 128) * 128
        block_b = max(128, min(4096, half))
    else:
        block_b = max(128, pl.cdiv(block_b, 128) * 128)
    tb = block_b
    nb = pl.cdiv(B, tb)

    # Feature-major weights (tiny one-off layout ops on ~66 KB of params).
    w1t = jnp.transpose(w1)                                 # (H1, obs_dim)
    w2t = jnp.transpose(w2)                                 # (H2, H1)
    if use_bf16_matmul:
        # Optional reduced-precision layer-2 operands; accumulation stays f32
        # in-kernel.  Likely exceeds 1e-4 tolerance -> keep gated.
        w2t = w2t.astype(jnp.bfloat16)
    b1t = b1.reshape(H1, 1)
    b2t = b2.reshape(H2, 1)
    w3c = w3.reshape(H2, 1)
    b3s = b3.reshape(1, 1)

    flops = 2 * nb * tb * (obs_dim * H1 + H1 * H2 + H2)
    param_bytes = sum(int(p.size) * p.dtype.itemsize
                      for p in (w1t, b1t, w2t, b2t, w3c, b3s))
    bytes_accessed = int(B * obs_dim * 4 + nb * tb * 4 + param_bytes)

    def resident(a):  # full array, VMEM-resident across all grid steps
        return pl.BlockSpec(a.shape, lambda i: (0,) * a.ndim)

    out = pl.pallas_call(
        _valuenet_kernel,
        out_shape=jax.ShapeDtypeStruct((nb, 1, tb), jnp.float32),
        grid=(nb,),
        in_specs=[
            pl.BlockSpec((tb, obs_dim), lambda i: (i, 0)),      # x, batch-major tile
            resident(w1t), resident(b1t),
            resident(w2t), resident(b2t),
            resident(w3c),
            pl.BlockSpec(memory_space=pltpu.MemorySpace.SMEM),  # b3 scalar in SMEM
        ],
        out_specs=pl.BlockSpec((1, 1, tb), lambda i: (i, 0, 0)),
        compiler_params=pltpu.CompilerParams(
            dimension_semantics=("parallel",),                  # megacore on v7x
            vmem_limit_bytes=32 * 1024 * 1024,                  # ample for TB <= 8192
        ),
        cost_estimate=pl.CostEstimate(
            flops=flops, transcendentals=0, bytes_accessed=bytes_accessed),
    )(x, w1t, b1t, w2t, b2t, w3c, b3s)

    # Tail columns of the last tile were computed from undefined partial-block
    # reads; there is no cross-batch mixing, so they are simply sliced off.
    return out.reshape(nb * tb)[:B].reshape(B, 1)


def init_params(key, obs_dim=6, hl=(128, 128)):
    """Deterministic init mimicking torch.nn.Linear default U[-1/sqrt(fan_in), +]."""
    dims = [obs_dim, *hl, 1]
    params = {}
    for i in range(len(dims) - 1):
        fan_in, fan_out = dims[i], dims[i + 1]
        key, kw, kb = jax.random.split(key, 3)
        bound = 1.0 / jnp.sqrt(fan_in)
        params[f"w{i + 1}"] = jax.random.uniform(
            kw, (fan_in, fan_out), jnp.float32, minval=-bound, maxval=bound
        )
        params[f"b{i + 1}"] = jax.random.uniform(
            kb, (1, fan_out), jnp.float32, minval=-bound, maxval=bound
        )
    return params


def value_net_reference(x, params):
    """Pure-JAX reference for correctness checking."""
    h = jnp.maximum(x @ params["w1"] + params["b1"], 0.0)
    h = jnp.maximum(h @ params["w2"] + params["b2"], 0.0)
    return h @ params["w3"] + params["b3"]


if __name__ == "__main__":
    key = jax.random.PRNGKey(0)
    key, kx1, kx2 = jax.random.split(key, 3)

    obs_dim = 6
    params = init_params(key, obs_dim=obs_dim, hl=(128, 128))

    # Small-batch check (single partial tile).
    batch = 8
    x = jax.random.normal(kx1, (batch, obs_dim), jnp.float32)
    out = jax.block_until_ready(value_net_forward(x, params))
    ref = value_net_reference(x, params)
    assert out.shape == (batch, 1), out.shape
    assert jnp.allclose(out, ref, atol=1e-4, rtol=1e-4), (
        f"max abs err = {jnp.max(jnp.abs(out - ref))}"
    )

    # Multi-tile check (exercises the >=2-tile path and the ragged last tile).
    batch2 = 300
    x2 = jax.random.normal(kx2, (batch2, obs_dim), jnp.float32)
    out2 = jax.block_until_ready(value_net_forward(x2, params))
    ref2 = value_net_reference(x2, params)
    assert out2.shape == (batch2, 1), out2.shape
    assert jnp.allclose(out2, ref2, atol=1e-4, rtol=1e-4), (
        f"max abs err = {jnp.max(jnp.abs(out2 - ref2))}"
    )

    print("KERNEL_OK")
</pallas_src>

<mosaic_0001>
module attributes {stable_mosaic.version = 11 : i64} {
  func.func @_valuenet_kernel(%arg0: i32, %arg1: memref<128x6xf32, #tpu.memory_space<vmem>>, %arg2: memref<128x6xf32, #tpu.memory_space<vmem>>, %arg3: memref<128x1xf32, #tpu.memory_space<vmem>>, %arg4: memref<128x128xf32, #tpu.memory_space<vmem>>, %arg5: memref<128x1xf32, #tpu.memory_space<vmem>>, %arg6: memref<128x1xf32, #tpu.memory_space<vmem>>, %arg7: memref<1x1xf32, #tpu.memory_space<smem>>, %arg8: memref<1x1x128xf32, #tpu.memory_space<vmem>>) attributes {dimension_semantics = [#tpu.dimension_semantics<parallel>], iteration_bounds = array<i64: 1>, scalar_prefetch = 0 : i64, scratch_operands = 0 : i64, tpu.core_type = #tpu.core_type<tc>, window_params = [{transform_indices = @transform_0, window_bounds = array<i64: 128, 6>}, {pipeline_mode = #tpu.pipeline_mode<synchronous>, transform_indices = @transform_1, window_bounds = array<i64: 128, 6>}, {pipeline_mode = #tpu.pipeline_mode<synchronous>, transform_indices = @transform_2, window_bounds = array<i64: 128, 1>}, {pipeline_mode = #tpu.pipeline_mode<synchronous>, transform_indices = @transform_3, window_bounds = array<i64: 128, 128>}, {pipeline_mode = #tpu.pipeline_mode<synchronous>, transform_indices = @transform_4, window_bounds = array<i64: 128, 1>}, {pipeline_mode = #tpu.pipeline_mode<synchronous>, transform_indices = @transform_5, window_bounds = array<i64: 128, 1>}, {transform_indices = @transform_6, window_bounds = array<i64: 1, 1>}, {transform_indices = @transform_7, window_bounds = array<i64: 1, 1, 128>}]} {
    %c0 = arith.constant 0 : index
    %c0_0 = arith.constant 0 : index
    %0 = vector.load %arg2[%c0, %c0_0] : memref<128x6xf32, #tpu.memory_space<vmem>>, vector<128x6xf32>
    %c0_1 = arith.constant 0 : index
    %c0_2 = arith.constant 0 : index
    %1 = vector.load %arg1[%c0_1, %c0_2] : memref<128x6xf32, #tpu.memory_space<vmem>>, vector<128x6xf32>
    %cst = arith.constant dense<0.000000e+00> : vector<128x128xf32>
    %2 = tpu.matmul %0, %1, %cst {dimension_numbers = #tpu.dot_dimension_numbers<[1], [1], [0], [0], [0, 0, 1, 0], [], []>} : vector<128x6xf32>, vector<128x6xf32>, vector<128x128xf32> -> vector<128x128xf32>
    %c0_3 = arith.constant 0 : index
    %c0_4 = arith.constant 0 : index
    %3 = vector.load %arg3[%c0_3, %c0_4] : memref<128x1xf32, #tpu.memory_space<vmem>>, vector<128x1xf32>
    %4 = vector.broadcast %3 : vector<128x1xf32> to vector<128x128xf32>
    %5 = arith.addf %2, %4 : vector<128x128xf32>
    %cst_5 = arith.constant 0.000000e+00 : f32
    %6 = vector.broadcast %cst_5 : f32 to vector<128x128xf32>
    %7 = arith.maximumf %5, %6 : vector<128x128xf32>
    %c0_6 = arith.constant 0 : index
    %c0_7 = arith.constant 0 : index
    %8 = vector.load %arg4[%c0_6, %c0_7] : memref<128x128xf32, #tpu.memory_space<vmem>>, vector<128x128xf32>
    %cst_8 = arith.constant dense<0.000000e+00> : vector<128x128xf32>
    %9 = tpu.matmul %8, %7, %cst_8 {dimension_numbers = #tpu.dot_dimension_numbers<[1], [0], [0], [1], [0, 0, 1, 1], [], []>} : vector<128x128xf32>, vector<128x128xf32>, vector<128x128xf32> -> vector<128x128xf32>
    %c0_9 = arith.constant 0 : index
    %c0_10 = arith.constant 0 : index
    %10 = vector.load %arg5[%c0_9, %c0_10] : memref<128x1xf32, #tpu.memory_space<vmem>>, vector<128x1xf32>
    %11 = vector.broadcast %10 : vector<128x1xf32> to vector<128x128xf32>
    %12 = arith.addf %9, %11 : vector<128x128xf32>
    %cst_11 = arith.constant 0.000000e+00 : f32
    %13 = vector.broadcast %cst_11 : f32 to vector<128x128xf32>
    %14 = arith.maximumf %12, %13 : vector<128x128xf32>
    %c0_12 = arith.constant 0 : index
    %c0_13 = arith.constant 0 : index
    %15 = vector.load %arg6[%c0_12, %c0_13] : memref<128x1xf32, #tpu.memory_space<vmem>>, vector<128x1xf32>
    %16 = vector.broadcast %15 : vector<128x1xf32> to vector<128x128xf32>
    %17 = arith.mulf %14, %16 : vector<128x128xf32>
    %cst_14 = arith.constant dense<0.000000e+00> : vector<128xf32>
    %18 = vector.multi_reduction <add>, %17, %cst_14 [0] : vector<128x128xf32> to vector<128xf32>
    %19 = vector.shape_cast %18 : vector<128xf32> to vector<1x128xf32>
    %c0_15 = arith.constant 0 : index
    %c0_16 = arith.constant 0 : index
    %20 = memref.load %arg7[%c0_15, %c0_16] : memref<1x1xf32, #tpu.memory_space<smem>>
    %21 = vector.broadcast %20 : f32 to vector<1x128xf32>
    %22 = arith.addf %19, %21 : vector<1x128xf32>
    %23 = vector.shape_cast %22 : vector<1x128xf32> to vector<1x1x128xf32>
    %c0_17 = arith.constant 0 : index
    %c0_18 = arith.constant 0 : index
    %c0_19 = arith.constant 0 : index
    %24 = vector.load %arg8[%c0_17, %c0_18, %c0_19] : memref<1x1x128xf32, #tpu.memory_space<vmem>>, vector<1x1x128xf32>
    tpu.vector_store %arg8[%c0_17, %c0_18, %c0_19], %23 {strides = array<i32>} : memref<1x1x128xf32, #tpu.memory_space<vmem>>, vector<1x1x128xf32>,
    return
  }
  func.func @transform_0(%arg0: i32) -> (i32, i32) {
    %c0_i32 = arith.constant 0 : i32
    %c0_i32_0 = arith.constant 0 : i32
    return %arg0, %c0_i32 : i32, i32
  }
  func.func @transform_1(%arg0: i32) -> (i32, i32) {
    %c0_i32 = arith.constant 0 : i32
    %c0_i32_0 = arith.constant 0 : i32
    %c0_i32_1 = arith.constant 0 : i32
    return %c0_i32, %c0_i32_0 : i32, i32
  }
  func.func @transform_2(%arg0: i32) -> (i32, i32) {
    %c0_i32 = arith.constant 0 : i32
    %c0_i32_0 = arith.constant 0 : i32
    %c0_i32_1 = arith.constant 0 : i32
    return %c0_i32, %c0_i32_0 : i32, i32
  }
  func.func @transform_3(%arg0: i32) -> (i32, i32) {
    %c0_i32 = arith.constant 0 : i32
    %c0_i32_0 = arith.constant 0 : i32
    %c0_i32_1 = arith.constant 0 : i32
    return %c0_i32, %c0_i32_0 : i32, i32
  }
  func.func @transform_4(%arg0: i32) -> (i32, i32) {
    %c0_i32 = arith.constant 0 : i32
    %c0_i32_0 = arith.constant 0 : i32
    %c0_i32_1 = arith.constant 0 : i32
    return %c0_i32, %c0_i32_0 : i32, i32
  }
  func.func @transform_5(%arg0: i32) -> (i32, i32) {
    %c0_i32 = arith.constant 0 : i32
    %c0_i32_0 = arith.constant 0 : i32
    %c0_i32_1 = arith.constant 0 : i32
    return %c0_i32, %c0_i32_0 : i32, i32
  }
  func.func @transform_6(%arg0: i32) -> (i32, i32) {
    %c0_i32 = arith.constant 0 : i32
    %c0_i32_0 = arith.constant 0 : i32
    %c0_i32_1 = arith.constant 0 : i32
    return %c0_i32, %c0_i32_0 : i32, i32
  }
  func.func @transform_7(%arg0: i32) -> (i32, i32, i32) {
    %c0_i32 = arith.constant 0 : i32
    %c0_i32_0 = arith.constant 0 : i32
    %c0_i32_1 = arith.constant 0 : i32
    return %arg0, %c0_i32, %c0_i32_0 : i32, i32, i32
  }
}

</mosaic_0001>

<bundles_post_ra>
// kernel: tpu_custom_call.1
= control target key start
LH: loop header
LB: loop body
LE: loop exit
PB: predicated region body
PF: predicated region fallthrough
CT: control target
= control target key end

     0   :  { %vm156_vm0 = vcmask 48128   ;;  %v1154_v6 = vmov 0   ;;  %s1553_s0 = inlined_call_operand.vmem [shape: f32[8,6], index: 0, kind: input, shape index: {}]   ;;  %s1554_s1 = inlined_call_operand.vmem [shape: f32[128,6], index: 1, kind: input, shape index: {}]   ;;  %s1555_s2 = inlined_call_operand.vmem [shape: f32[128,1], index: 2, kind: input, shape index: {}]   ;;  %s1556_s3 = inlined_call_operand.vmem [shape: f32[128,128], index: 3, kind: input, shape index: {}]   ;;  %s1557_s4 = inlined_call_operand.vmem [shape: f32[128,1], index: 4, kind: input, shape index: {}]   ;;  %s1558_s5 = inlined_call_operand.vmem [shape: f32[128,1], index: 5, kind: input, shape index: {}]   ;;  %s1559_s6 = inlined_call_operand.<no memory space> [shape: f32[1,1], index: 6, kind: input, shape index: {}]   ;;  %s1560_s7 = inlined_call_operand.hbm [shape: f32[1,1,128], index: 7, kind: output, shape index: {}]  }
   0x1   :  { %v44_v0 = vld [vmem:[%s1553_s0] sm:$0xff]  ;;  %v45_v1 = vld [vmem:[%s1553_s0 + $0x8] sm:$0xff]  ;;  %v46_v2 = vld [vmem:[%s1553_s0 + $0x10] sm:$0xff]  ;;  %1128 = vset.pattern.permute.xlu0 %v1154_v6  ;;  %1129 = vset.pattern.permute.xlu1 %v1154_v6 }
   0x2   :  { %v1046_v3 = vpack.c.bf16 %v45_v1, %v44_v0  ;;  %vm1207_vm1 = vmpackc.low %vm156_vm0, %vm156_vm0  ;;  %v47_v5 = vld [vmem:[%s1553_s0 + $0x18] sm:$0xff]  ;;  %v60_v8 = vld [vmem:[%s1555_s2] sm:$0xff] }
   0x3   :  { %v1052_v7 = vpack.c.bf16 %v47_v5, %v46_v2  ;;  %v48_v9 = vld [vmem:[%s1553_s0 + $0x20] sm:$0xff]  ;;  %v49_v10 = vld [vmem:[%s1553_s0 + $0x28] sm:$0xff]  ;;  %78 = vperm.xlu0 %1128, %v60_v8   ;;  %v62_v11 = vld [vmem:[%s1555_s2 + $0x10] sm:$0xff] }
   0x4   :  { %1048 = vmatprep.subr.msk.bf16.mxu0 %vm1207_vm1, %v1046_v3  ;;  %88 = vperm.xlu1 %1129, %v62_v11   ;;  %v61_v12 = vld [vmem:[%s1555_s2 + $0x8] sm:$0xff]  ;;  %v28_v13 = vld [vmem:[%s1554_s1] sm:$0xff]  ;;  %v63_v14 = vld [vmem:[%s1555_s2 + $0x18] sm:$0xff]  ;;  %v1058_v15 = vpack.c.bf16 %v49_v10, %v48_v9 }
   0x5   :  { %1051 = vmatpush3.bf16.xpose.msk.msra.mxu0 %vm1207_vm1, %v1046_v3  ;;  %966 = vmatprep.mubr.msk.f32.mxu0 %vm156_vm0, %v28_v13  ;;  %v64_v16 = vld [vmem:[%s1555_s2 + $0x20] sm:$0xff]  ;;  %v65_v17 = vld [vmem:[%s1555_s2 + $0x28] sm:$0xff]  ;;  %v50_v18 = vld [vmem:[%s1553_s0 + $0x30] sm:$0xff] }
   0x6   :  { %1054 = vmatprep.subr.msk.bf16.mxu0 %vm1207_vm1, %v1052_v7  ;;  %v51_v19 = vld [vmem:[%s1553_s0 + $0x38] sm:$0xff]  ;;  %v66_v20 = vld [vmem:[%s1555_s2 + $0x30] sm:$0xff]  ;;  %v68_v23 = vld [vmem:[%s1555_s2 + $0x40] sm:$0xff] }
   0x7   :  { %83 = vperm.xlu0 %1128, %v61_v12   ;;  %v67_v21 = vld [vmem:[%s1555_s2 + $0x38] sm:$0xff]  ;;  %v1064_v22 = vpack.c.bf16 %v51_v19, %v50_v18  ;;  %v69_v24 = vld [vmem:[%s1555_s2 + $0x48] sm:$0xff]  ;;  %v52_v25 = vld [vmem:[%s1553_s0 + $0x40] sm:$0xff] }
   0x8   :  { %93 = vperm.xlu1 %1129, %v63_v14   ;;  %v53_v26 = vld [vmem:[%s1553_s0 + $0x48] sm:$0xff]  ;;  %v70_v27 = vld [vmem:[%s1555_s2 + $0x50] sm:$0xff]  ;;  %v71_v28 = vld [vmem:[%s1555_s2 + $0x58] sm:$0xff] }
   0x9   :  { %v1070_v29 = vpack.c.bf16 %v53_v26, %v52_v25  ;;  %v72_v30 = vld [vmem:[%s1555_s2 + $0x60] sm:$0xff] }
   0xb   :  { %98 = vperm.xlu0 %1128, %v64_v16  }
   0xc   :  { %103 = vperm.xlu1 %1129, %v65_v17  }
   0xd   :  { %1057 = vmatpush3.bf16.xpose.msk.msra.mxu0 %vm1207_vm1, %v1052_v7 }
   0xe   :  { %1060 = vmatprep.subr.msk.bf16.mxu0 %vm1207_vm1, %v1058_v15 }
   0xf   :  { %108 = vperm.xlu0 %1128, %v66_v20  }
  0x10   :  { %113 = vperm.xlu1 %1129, %v67_v21  }
  0x13   :  { %118 = vperm.xlu0 %1128, %v68_v23  }
  0x14   :  { %123 = vperm.xlu1 %1129, %v69_v24  }
  0x15   :  { %1063 = vmatpush3.bf16.xpose.msk.msra.mxu0 %vm1207_vm1, %v1058_v15 }
  0x16   :  { %1066 = vmatprep.subr.msk.bf16.mxu0 %vm1207_vm1, %v1064_v22 }
  0x17   :  { %128 = vperm.xlu0 %1128, %v70_v27  }
  0x18   :  { %133 = vperm.xlu1 %1129, %v71_v28  }
  0x19   :  { %13 = vsyncpa [#allocation4], 0  ;;  %v73_v31 = vld [vmem:[%s1555_s2 + $0x68] sm:$0xff]  ;;  %v54_v32 = vld [vmem:[%s1553_s0 + $0x50] sm:$0xff]  ;;  %s1155_s17 = smov [#allocation3]  }
  0x1a   :  { %v55_v33 = vld [vmem:[%s1553_s0 + $0x58] sm:$0xff]  ;;  %v74_v34 = vld [vmem:[%s1555_s2 + $0x70] sm:$0xff]  ;;  %v430_v37 = vld [vmem:[%s1557_s4] sm:$0xff]  ;;  %s830_s18 = sshll.u32 %s1155_s17, 4  ;;  %s831_s18 = int_to_ptr.vmem [resolvable:$true] %s830_s18 }
  0x1b   :  { %138 = vperm.xlu0 %1128, %v72_v30   ;;  %v75_v35 = vld [vmem:[%s1555_s2 + $0x78] sm:$0xff]  ;;  %v1076_v36 = vpack.c.bf16 %v55_v33, %v54_v32  ;;  %v431_v38 = vld [vmem:[%s1557_s4 + $0x8] sm:$0xff]  ;;  %v56_v39 = vld [vmem:[%s1553_s0 + $0x60] sm:$0xff]  ;;  %s1130_s2 = scalar_lea.vmem %s831_s18, 16  ;;  %s1134_s19 = scalar_lea.vmem %s831_s18, 32 }
  0x1c   :  { %143 = vperm.xlu1 %1129, %v73_v31   ;;  %v57_v40 = vld [vmem:[%s1553_s0 + $0x68] sm:$0xff]  ;;  %v432_v41 = vld [vmem:[%s1557_s4 + $0x10] sm:$0xff]  ;;  %v433_v42 = vld [vmem:[%s1557_s4 + $0x18] sm:$0xff]  ;;  %p1131_p0 = scmp.ne.s32.totalorder %s831_s18, %s1130_s2  ;;  %p1135_p1 = scmp.lt.s32.totalorder %s831_s18, %s831_s18 }
  0x1d   :  { %1069 = vmatpush3.bf16.xpose.msk.msra.mxu0 %vm1207_vm1, %v1064_v22  ;;  %v1082_v43 = vpack.c.bf16 %v57_v40, %v56_v39  ;;  %v687_v44 = vld [vmem:[%s1558_s5] sm:$0xff]  ;;  %v688_v45 = vld [vmem:[%s1558_s5 + $0x8] sm:$0xff]  ;;  %v58_v46 = vld [vmem:[%s1553_s0 + $0x70] sm:$0xff]  ;;  %p1136_p2 = scmp.lt.s32.totalorder %s1134_s19, %s1130_s2 }
  0x1e   :  { %1072 = vmatprep.subr.msk.bf16.mxu0 %vm1207_vm1, %v1070_v29  ;;  %v59_v47 = vld [vmem:[%s1553_s0 + $0x78] sm:$0xff]  ;;  %v434_v48 = vld [vmem:[%s1557_s4 + $0x20] sm:$0xff]  ;;  %v689_v49 = vld [vmem:[%s1558_s5 + $0x10] sm:$0xff] }
  0x1f   :  { %148 = vperm.xlu0 %1128, %v74_v34   ;;  %v1088_v50 = vpack.c.bf16 %v59_v47, %v58_v46  ;;  %v435_v51 = vld [vmem:[%s1557_s4 + $0x28] sm:$0xff]  ;;  %v690_v52 = vld [vmem:[%s1558_s5 + $0x18] sm:$0xff]  ;;  %v436_v53 = vld [vmem:[%s1557_s4 + $0x30] sm:$0xff]  ;;  %p1137_p3 = por %p1136_p2, %p1135_p1 }
  0x20   :  { %153 = vperm.xlu1 %1129, %v75_v35   ;;  %v691_v54 = vld [vmem:[%s1558_s5 + $0x20] sm:$0xff]  ;;  %v437_v55 = vld [vmem:[%s1557_s4 + $0x38] sm:$0xff]  ;;  %v692_v56 = vld [vmem:[%s1558_s5 + $0x28] sm:$0xff] }
  0x21   :  { %v438_v57 = vld [vmem:[%s1557_s4 + $0x40] sm:$0xff]  ;;  %v29_v58 = vld [vmem:[%s1554_s1 + $0x8] sm:$0xff]  ;;  %v693_v59 = vld [vmem:[%s1558_s5 + $0x30] sm:$0xff]  ;;  %p1138_p4 = pnand %p1137_p3, %p1131_p0 }
  0x22   :  { %v30_v60 = vld [vmem:[%s1554_s1 + $0x10] sm:$0xff]  ;;  %v439_v61 = vld [vmem:[%s1557_s4 + $0x48] sm:$0xff]  ;;  %v31_v62 = vld [vmem:[%s1554_s1 + $0x18] sm:$0xff] }
  0x23   :  { %448 = vperm.xlu0 %1128, %v430_v37   ;;  %v694_v63 = vld [vmem:[%s1558_s5 + $0x38] sm:$0xff]  ;;  %v32_v0 = vld [vmem:[%s1554_s1 + $0x20] sm:$0xff]  ;;  %v440_v1 = vld [vmem:[%s1557_s4 + $0x50] sm:$0xff] }
  0x24   :  { %453 = vperm.xlu1 %1129, %v431_v38   ;;  %v33_v2 = vld [vmem:[%s1554_s1 + $0x28] sm:$0xff]  ;;  %v695_v3 = vld [vmem:[%s1558_s5 + $0x40] sm:$0xff]  ;;  %v34_v4 = vld [vmem:[%s1554_s1 + $0x30] sm:$0xff] }
  0x25   :  { %1075 = vmatpush3.bf16.xpose.msk.msra.mxu0 %vm1207_vm1, %v1070_v29  ;;  %v441_v5 = vld [vmem:[%s1557_s4 + $0x58] sm:$0xff]  ;;  %v696_v7 = vld [vmem:[%s1558_s5 + $0x48] sm:$0xff]  ;;  %v36_v8 = vld [vmem:[%s1554_s1 + $0x40] sm:$0xff] }
  0x26   :  { %1078 = vmatprep.subr.msk.bf16.mxu0 %vm1207_vm1, %v1076_v36  ;;  %v35_v6 = vld [vmem:[%s1554_s1 + $0x38] sm:$0xff]  ;;  %v442_v9 = vld [vmem:[%s1557_s4 + $0x60] sm:$0xff]  ;;  %v37_v10 = vld [vmem:[%s1554_s1 + $0x48] sm:$0xff] }
  0x27   :  { %458 = vperm.xlu0 %1128, %v432_v41   ;;  %v697_v11 = vld [vmem:[%s1558_s5 + $0x50] sm:$0xff]  ;;  %v443_v13 = vld [vmem:[%s1557_s4 + $0x68] sm:$0xff]  ;;  %v39_v14 = vld [vmem:[%s1554_s1 + $0x58] sm:$0xff] }
  0x28   :  { %463 = vperm.xlu1 %1129, %v433_v42   ;;  %v38_v12 = vld [vmem:[%s1554_s1 + $0x50] sm:$0xff]  ;;  %v698_v15 = vld [vmem:[%s1558_s5 + $0x58] sm:$0xff]  ;;  %v40_v16 = vld [vmem:[%s1554_s1 + $0x60] sm:$0xff] }
  0x29   :  { %v444_v17 = vld [vmem:[%s1557_s4 + $0x70] sm:$0xff]  ;;  %v41_v18 = vld [vmem:[%s1554_s1 + $0x68] sm:$0xff]  ;;  %v699_v19 = vld [vmem:[%s1558_s5 + $0x60] sm:$0xff] }
  0x2a   :  { %v42_v20 = vld [vmem:[%s1554_s1 + $0x70] sm:$0xff]  ;;  %v445_v21 = vld [vmem:[%s1557_s4 + $0x78] sm:$0xff]  ;;  %v700_v23 = vld [vmem:[%s1558_s5 + $0x68] sm:$0xff] }
  0x2b   :  { %705 = vperm.xlu0 %1128, %v687_v44   ;;  %v43_v22 = vld [vmem:[%s1554_s1 + $0x78] sm:$0xff]  ;;  %v701_v24 = vld [vmem:[%s1558_s5 + $0x70] sm:$0xff]  ;;  %v414_v26 = vld [vmem:[%s1556_s3] sm:$0xff] }
  0x2c   :  { %710 = vperm.xlu1 %1129, %v688_v45   ;;  %v702_v25 = vld [vmem:[%s1558_s5 + $0x78] sm:$0xff]  ;;  %1022 = vmatprep.mubr.f32.mxu1 %v414_v26 }
  0x2d   :  { %1081 = vmatpush3.bf16.xpose.msk.msra.mxu0 %vm1207_vm1, %v1076_v36 }
  0x2e   :  { %1084 = vmatprep.subr.msk.bf16.mxu0 %vm1207_vm1, %v1082_v43 }
  0x2f   :  { %468 = vperm.xlu0 %1128, %v434_v48  }
  0x30   :  { %715 = vperm.xlu1 %1129, %v689_v49  }
  0x33   :  { %473 = vperm.xlu0 %1128, %v435_v51  }
  0x34   :  { %720 = vperm.xlu1 %1129, %v690_v52  }
  0x35   :  { %1087 = vmatpush3.bf16.xpose.msk.msra.mxu0 %vm1207_vm1, %v1082_v43 }
  0x36   :  { %1090 = vmatprep.subr.msk.bf16.mxu0 %vm1207_vm1, %v1088_v50 }
  0x37   :  { %478 = vperm.xlu0 %1128, %v436_v53  }
  0x38   :  { %725 = vperm.xlu1 %1129, %v691_v54  }
  0x3b   :  { %483 = vperm.xlu0 %1128, %v437_v55  }
  0x3c   :  { %730 = vperm.xlu1 %1129, %v692_v56  }
  0x3d   :  { %1093 = vmatpush3.bf16.xpose.msk.msra.mxu0 %vm1207_vm1, %v1088_v50 }
  0x3f   :  { %488 = vperm.xlu0 %1128, %v438_v57  }
  0x40   :  { %735 = vperm.xlu1 %1129, %v693_v59  }
  0x43   :  { %493 = vperm.xlu0 %1128, %v439_v61  }
  0x44   :  { %967 = vmatmul.mubr.msk.f32.vlgmr.msra.gmra.mrb[0].mxu0 %vm156_vm0, %v29_v58  ;;  %740 = vperm.xlu1 %1129, %v694_v63  }
  0x45   :  { %969 = vmatprep.mubr.msk.f32.mxu0 %vm156_vm0, %v30_v60 }
  0x47   :  { %498 = vperm.xlu0 %1128, %v440_v1  }
  0x48   :  { %970 = vmatmul.mubr.msk.f32.gmra.mrb[2].mxu0 %vm156_vm0, %v31_v62  ;;  %745 = vperm.xlu1 %1129, %v695_v3  }
  0x49   :  { %972 = vmatprep.mubr.msk.f32.mxu0 %vm156_vm0, %v32_v0 }
  0x4b   :  { %503 = vperm.xlu0 %1128, %v441_v5  }
  0x4c   :  { %973 = vmatmul.mubr.msk.f32.gmra.mrb[4].mxu0 %vm156_vm0, %v33_v2  ;;  %750 = vperm.xlu1 %1129, %v696_v7  }
  0x4d   :  { %975 = vmatprep.mubr.msk.f32.mxu0 %vm156_vm0, %v34_v4 }
  0x4f   :  { %508 = vperm.xlu0 %1128, %v442_v9  }
  0x50   :  { %976 = vmatmul.mubr.msk.f32.gmra.mrb[6].mxu0 %vm156_vm0, %v35_v6  ;;  %755 = vperm.xlu1 %1129, %v697_v11  }
  0x51   :  { %978 = vmatprep.mubr.msk.f32.mxu0 %vm156_vm0, %v36_v8 }
  0x53   :  { %513 = vperm.xlu0 %1128, %v443_v13  }
  0x54   :  { %979 = vmatmul.mubr.msk.f32.gmra.mrb[8].mxu0 %vm156_vm0, %v37_v10  ;;  %760 = vperm.xlu1 %1129, %v698_v15  }
  0x55   :  { %981 = vmatprep.mubr.msk.f32.mxu0 %vm156_vm0, %v38_v12 }
  0x57   :  { %518 = vperm.xlu0 %1128, %v444_v17  }
  0x58   :  { %982 = vmatmul.mubr.msk.f32.gmra.mrb[10].mxu0 %vm156_vm0, %v39_v14  ;;  %765 = vperm.xlu1 %1129, %v699_v19  }
  0x59   :  { %984 = vmatprep.mubr.msk.f32.mxu0 %vm156_vm0, %v40_v16 }
  0x5b   :  { %523 = vperm.xlu0 %1128, %v445_v21  }
  0x5c   :  { %985 = vmatmul.mubr.msk.f32.gmra.mrb[12].mxu0 %vm156_vm0, %v41_v18  ;;  %770 = vperm.xlu1 %1129, %v700_v23  }
  0x5d   :  { %987 = vmatprep.mubr.msk.f32.mxu0 %vm156_vm0, %v42_v20 }
  0x5f   :  { %775 = vperm.xlu0 %1128, %v701_v24  }
  0x60   :  { %988 = vmatmul.mubr.msk.f32.gmra.mrb[14].mxu0 %vm156_vm0, %v43_v22  ;;  %780 = vperm.xlu1 %1129, %v702_v25  }
  0x82   :  { %v79_v28 = vpop.permute.xlu0 %78 }
  0x83   :  { %v89_v27 = vpop.permute.xlu1 %88 }
  0x86   :  { %v84_v30 = vpop.permute.xlu0 %83 }
  0x87   :  { %v94_v29 = vpop.permute.xlu1 %93 }
  0x8a   :  { %v99_v32 = vpop.permute.xlu0 %98 }
  0x8b   :  { %v104_v31 = vpop.permute.xlu1 %103 }
  0x8e   :  { %v109_v41 = vpop.permute.xlu0 %108 }
  0x8f   :  { %v114_v38 = vpop.permute.xlu1 %113 }
  0x92   :  { %v119_v54 = vpop.permute.xlu0 %118 }
  0x93   :  { %v124_v51 = vpop.permute.xlu1 %123 }
  0x96   :  { %v129_v2 = vpop.permute.xlu0 %128 }
  0x97   :  { %v134_v63 = vpop.permute.xlu1 %133 }
  0x9a   :  { %v139_v15 = vpop.permute.xlu0 %138 }
  0x9b   :  { %v144_v12 = vpop.permute.xlu1 %143 }
  0x9f   :  { %v154_v24 = vpop.permute.xlu1 %153 }
 0x117   :  { %v968_v33 = vpop.f32.mrb[0].mxu0 }
 0x118   :  { %v325_v34 = vadd.f32 %v968_v33, %v84_v30  ;;  %v319_v35 = vpop.f32.mrb[1].mxu0 }
 0x119   :  { %v320_v36 = vadd.f32 %v319_v35, %v79_v28  ;;  %v415_v35 = vld [vmem:[%s1556_s3 + $0x8] sm:$0xff] }
 0x11a   :  { %v399_v37 = vmax.f32 %v325_v34, 0.0 }
 0x11b   :  { %v398_v39 = vmax.f32 %v320_v36, 0.0  ;;  %v971_v40 = vpop.f32.mrb[2].mxu0  ;;  %v416_v36 = vld [vmem:[%s1556_s3 + $0x10] sm:$0xff] }
 0x11c   :  { %v335_v42 = vadd.f32 %v971_v40, %v94_v29  ;;  %v329_v43 = vpop.f32.mrb[3].mxu0  ;;  %v420_v40 = vld [vmem:[%s1556_s3 + $0x30] sm:$0xff] }
 0x11d   :  { %v330_v44 = vadd.f32 %v329_v43, %v89_v27  ;;  %v1094_v45 = vpack.c.bf16 %v399_v37, %v398_v39  ;;  %v149_v27 = vpop.permute.xlu0 %148  ;;  %v417_v37 = vld [vmem:[%s1556_s3 + $0x18] sm:$0xff]  ;;  %v419_v39 = vld [vmem:[%s1556_s3 + $0x28] sm:$0xff] }
 0x11e   :  { %v401_v46 = vmax.f32 %v335_v42, 0.0  ;;  %v422_v42 = vld [vmem:[%s1556_s3 + $0x40] sm:$0xff]  ;;  %v423_v43 = vld [vmem:[%s1556_s3 + $0x48] sm:$0xff] }
 0x11f   :  { %v400_v47 = vmax.f32 %v330_v44, 0.0  ;;  %v974_v48 = vpop.f32.mrb[4].mxu0  ;;  %1095 = vmatprep.subr.bf16.mxu1 %v1094_v45  ;;  %v424_v44 = vld [vmem:[%s1556_s3 + $0x50] sm:$0xff] }
 0x120   :  { %v345_v49 = vadd.f32 %v974_v48, %v104_v31  ;;  %v339_v50 = vpop.f32.mrb[5].mxu0  ;;  %1097 = vmatpush3.bf16.msra.mxu1 %v1094_v45  ;;  %v425_v45 = vld [vmem:[%s1556_s3 + $0x58] sm:$0xff]  ;;  %v428_v48 = vld [vmem:[%s1556_s3 + $0x70] sm:$0xff] }
 0x121   :  { %v1098_v52 = vpack.c.bf16 %v401_v46, %v400_v47  ;;  %v340_v53 = vadd.f32 %v339_v50, %v99_v32  ;;  %v426_v46 = vld [vmem:[%s1556_s3 + $0x60] sm:$0xff]  ;;  %v427_v47 = vld [vmem:[%s1556_s3 + $0x68] sm:$0xff]  ;;  %v449_v50 = vpop.permute.xlu0 %448 }
 0x122   :  { %v403_v55 = vmax.f32 %v345_v49, 0.0  ;;  %v429_v49 = vld [vmem:[%s1556_s3 + $0x78] sm:$0xff] }
 0x123   :  { %v402_v56 = vmax.f32 %v340_v53, 0.0  ;;  %v977_v57 = vpop.f32.mrb[6].mxu0  ;;  %1099 = vmatprep.subr.bf16.mxu1 %v1098_v52 }
 0x124   :  { %v355_v58 = vadd.f32 %v977_v57, %v114_v38  ;;  %v349_v59 = vpop.f32.mrb[7].mxu0  ;;  %1101 = vmatpush3.bf16.msra.mxu1 %v1098_v52  ;;  %v418_v38 = vld [vmem:[%s1556_s3 + $0x20] sm:$0xff] }
 0x125   :  { %v1102_v60 = vpack.c.bf16 %v403_v55, %v402_v56  ;;  %v350_v61 = vadd.f32 %v349_v59, %v109_v41  ;;  %v421_v41 = vld [vmem:[%s1556_s3 + $0x38] sm:$0xff]  ;;  %v459_v52 = vpop.permute.xlu0 %458 }
 0x126   :  { %v405_v62 = vmax.f32 %v355_v58, 0.0 }
 0x127   :  { %v404_v0 = vmax.f32 %v350_v61, 0.0  ;;  %v980_v1 = vpop.f32.mrb[8].mxu0  ;;  %1103 = vmatprep.subr.bf16.mxu1 %v1102_v60 }
 0x128   :  { %v365_v3 = vadd.f32 %v980_v1, %v124_v51  ;;  %v359_v4 = vpop.f32.mrb[9].mxu0  ;;  %1105 = vmatpush3.bf16.msra.mxu1 %v1102_v60  ;;  %v454_v51 = vpop.permute.xlu1 %453 }
 0x129   :  { %v1106_v5 = vpack.c.bf16 %v405_v62, %v404_v0  ;;  %v360_v6 = vadd.f32 %v359_v4, %v119_v54  ;;  %v706_v54 = vpop.permute.xlu0 %705 }
 0x12a   :  { %v407_v7 = vmax.f32 %v365_v3, 0.0 }
 0x12b   :  { %v406_v8 = vmax.f32 %v360_v6, 0.0  ;;  %v983_v9 = vpop.f32.mrb[10].mxu0  ;;  %1107 = vmatprep.subr.bf16.mxu1 %v1106_v5 }
 0x12c   :  { %v375_v10 = vadd.f32 %v983_v9, %v134_v63  ;;  %v369_v11 = vpop.f32.mrb[11].mxu0  ;;  %1109 = vmatpush3.bf16.msra.mxu1 %v1106_v5  ;;  %v464_v53 = vpop.permute.xlu1 %463 }
 0x12d   :  { %v1110_v13 = vpack.c.bf16 %v407_v7, %v406_v8  ;;  %v370_v14 = vadd.f32 %v369_v11, %v129_v2  ;;  %v469_v56 = vpop.permute.xlu0 %468 }
 0x12e   :  { %v409_v16 = vmax.f32 %v375_v10, 0.0 }
 0x12f   :  { %v408_v17 = vmax.f32 %v370_v14, 0.0  ;;  %v986_v18 = vpop.f32.mrb[12].mxu0  ;;  %1111 = vmatprep.subr.bf16.mxu1 %v1110_v13 }
 0x130   :  { %v385_v19 = vadd.f32 %v986_v18, %v144_v12  ;;  %v379_v20 = vpop.f32.mrb[13].mxu0  ;;  %1113 = vmatpush3.bf16.msra.mxu1 %v1110_v13  ;;  %v711_v55 = vpop.permute.xlu1 %710 }
 0x131   :  { %v1114_v21 = vpack.c.bf16 %v409_v16, %v408_v17  ;;  %v380_v22 = vadd.f32 %v379_v20, %v139_v15  ;;  %v474_v58 = vpop.permute.xlu0 %473 }
 0x132   :  { %v411_v23 = vmax.f32 %v385_v19, 0.0 }
 0x133   :  { %v410_v25 = vmax.f32 %v380_v22, 0.0  ;;  %v989_v26 = vpop.f32.mrb[14].mxu0  ;;  %1115 = vmatprep.subr.bf16.mxu1 %v1114_v21 }
 0x134   :  { %v395_v28 = vadd.f32 %v989_v26, %v154_v24  ;;  %v389_v29 = vpop.f32.mrb[15].mxu0  ;;  %1117 = vmatpush3.bf16.msra.mxu1 %v1114_v21  ;;  %v716_v57 = vpop.permute.xlu1 %715 }
 0x135   :  { %v1118_v30 = vpack.c.bf16 %v411_v23, %v410_v25  ;;  %v390_v31 = vadd.f32 %v389_v29, %v149_v27  ;;  %v479_v60 = vpop.permute.xlu0 %478 }
 0x136   :  { %v413_v32 = vmax.f32 %v395_v28, 0.0 }
 0x137   :  { %v412_v33 = vmax.f32 %v390_v31, 0.0  ;;  %1119 = vmatprep.subr.bf16.mxu1 %v1118_v30 }
 0x138   :  { %1121 = vmatpush3.bf16.msra.mxu1 %v1118_v30  ;;  %v721_v59 = vpop.permute.xlu1 %720 }
 0x139   :  { %v1122_v34 = vpack.c.bf16 %v413_v32, %v412_v33  ;;  %v484_v62 = vpop.permute.xlu0 %483 }
 0x13b   :  { %1123 = vmatprep.subr.bf16.mxu1 %v1122_v34 }
 0x13c   :  { %1125 = vmatpush3.bf16.msra.mxu1 %v1122_v34  ;;  %v726_v61 = vpop.permute.xlu1 %725 }
 0x13d   :  { %v489_v0 = vpop.permute.xlu0 %488 }
 0x13f   :  { %1023 = vmatmul.mubr.f32.vlgmr.msra.gmra.mrb[0].mxu1 %v415_v35 }
 0x140   :  { %1025 = vmatprep.mubr.f32.mxu1 %v416_v36  ;;  %v731_v63 = vpop.permute.xlu1 %730 }
 0x141   :  { %v494_v2 = vpop.permute.xlu0 %493 }
 0x143   :  { %1026 = vmatmul.mubr.f32.gmra.mrb[2].mxu1 %v417_v37 }
 0x144   :  { %1028 = vmatprep.mubr.f32.mxu1 %v418_v38  ;;  %v736_v1 = vpop.permute.xlu1 %735 }
 0x145   :  { %v499_v4 = vpop.permute.xlu0 %498 }
 0x147   :  { %1029 = vmatmul.mubr.f32.gmra.mrb[4].mxu1 %v419_v39 }
 0x148   :  { %1031 = vmatprep.mubr.f32.mxu1 %v420_v40  ;;  %v741_v3 = vpop.permute.xlu1 %740 }
 0x149   :  { %v504_v10 = vpop.permute.xlu0 %503 }
 0x14b   :  { %1032 = vmatmul.mubr.f32.gmra.mrb[6].mxu1 %v421_v41 }
 0x14c   :  { %1034 = vmatprep.mubr.f32.mxu1 %v422_v42  ;;  %v746_v5 = vpop.permute.xlu1 %745 }
 0x14d   :  { %v509_v24 = vpop.permute.xlu0 %508 }
 0x14f   :  { %1035 = vmatmul.mubr.f32.gmra.mrb[8].mxu1 %v423_v43 }
 0x150   :  { %1037 = vmatprep.mubr.f32.mxu1 %v424_v44  ;;  %v751_v14 = vpop.permute.xlu1 %750 }
 0x151   :  { %v514_v40 = vpop.permute.xlu0 %513 }
 0x153   :  { %1038 = vmatmul.mubr.f32.gmra.mrb[10].mxu1 %v425_v45 }
 0x154   :  { %1040 = vmatprep.mubr.f32.mxu1 %v426_v46  ;;  %v756_v29 = vpop.permute.xlu1 %755 }
 0x157   :  { %1041 = vmatmul.mubr.f32.gmra.mrb[12].mxu1 %v427_v47 }
 0x158   :  { %1043 = vmatprep.mubr.f32.mxu1 %v428_v48  ;;  %v761_v46 = vpop.permute.xlu1 %760 }
 0x15b   :  { %1044 = vmatmul.mubr.f32.gmra.mrb[14].mxu1 %v429_v49 }
 0x212   :  { %v1024_v6 = vpop.f32.mrb[0].mxu1 }
 0x213   :  { %v598_v7 = vadd.f32 %v1024_v6, %v454_v51  ;;  %v592_v8 = vpop.f32.mrb[1].mxu1 }
 0x214   :  { %v593_v9 = vadd.f32 %v592_v8, %v449_v50 }
 0x215   :  { %v672_v11 = vmax.f32 %v598_v7, 0.0 }
 0x216   :  { %v671_v12 = vmax.f32 %v593_v9, 0.0  ;;  %v1027_v13 = vpop.f32.mrb[2].mxu1 }
 0x217   :  { %v784_v15 = vmul.f32 %v711_v55, %v672_v11  ;;  %v608_v16 = vadd.f32 %v1027_v13, %v464_v53  ;;  %v602_v17 = vpop.f32.mrb[3].mxu1 }
 0x218   :  { %v783_v18 = vmul.f32 %v706_v54, %v671_v12  ;;  %v603_v19 = vadd.f32 %v602_v17, %v459_v52 }
 0x219   :  { %v674_v21 = vmax.f32 %v608_v16, 0.0 }
 0x21a   :  { %v799_v20 = vadd.f32 %v784_v15, %v783_v18  ;;  %v673_v22 = vmax.f32 %v603_v19, 0.0  ;;  %v1030_v23 = vpop.f32.mrb[4].mxu1 }
 0x21b   :  { %v618_v25 = vadd.f32 %v1030_v23, %v474_v58  ;;  %v612_v26 = vpop.f32.mrb[5].mxu1  ;;  %v786_v30 = vmul.f32 %v721_v59, %v674_v21 }
 0x21c   :  { %v785_v27 = vmul.f32 %v716_v57, %v673_v22  ;;  %v613_v28 = vadd.f32 %v612_v26, %v469_v56  ;;  %v519_v57 = vpop.permute.xlu0 %518 }
 0x21d   :  { %v676_v32 = vmax.f32 %v618_v25, 0.0 }
 0x21e   :  { %v800_v31 = vadd.f32 %v799_v20, %v785_v27  ;;  %v675_v33 = vmax.f32 %v613_v28, 0.0  ;;  %v1033_v34 = vpop.f32.mrb[6].mxu1 }
 0x21f   :  { %v628_v35 = vadd.f32 %v1033_v34, %v484_v62  ;;  %v622_v36 = vpop.f32.mrb[7].mxu1  ;;  %v788_v41 = vmul.f32 %v731_v63, %v676_v32  ;;  %v766_v63 = vpop.permute.xlu1 %765 }
 0x220   :  { %v787_v37 = vmul.f32 %v726_v61, %v675_v33  ;;  %v801_v38 = vadd.f32 %v800_v31, %v786_v30  ;;  %v623_v39 = vadd.f32 %v622_v36, %v479_v60  ;;  %v524_v13 = vpop.permute.xlu0 %523 }
 0x221   :  { %v678_v43 = vmax.f32 %v628_v35, 0.0 }
 0x222   :  { %v802_v42 = vadd.f32 %v801_v38, %v787_v37  ;;  %v677_v44 = vmax.f32 %v623_v39, 0.0  ;;  %v1036_v45 = vpop.f32.mrb[8].mxu1  ;;  %v821_v38 = vstv %s1559_s6 }
 0x223   :  { %v638_v47 = vadd.f32 %v1036_v45, %v494_v2  ;;  %v632_v48 = vpop.f32.mrb[9].mxu1  ;;  %v790_v52 = vmul.f32 %v741_v3, %v678_v43 }
 0x224   :  { %v789_v49 = vmul.f32 %v736_v1, %v677_v44  ;;  %v803_v50 = vadd.f32 %v802_v42, %v788_v41  ;;  %v633_v51 = vadd.f32 %v632_v48, %v489_v0  ;;  %v776_v27 = vpop.permute.xlu0 %775 }
 0x225   :  { %v680_v54 = vmax.f32 %v638_v47, 0.0 }
 0x226   :  { %v804_v53 = vadd.f32 %v803_v50, %v789_v49  ;;  %v679_v55 = vmax.f32 %v633_v51, 0.0  ;;  %v1039_v56 = vpop.f32.mrb[10].mxu1 }
 0x227   :  { %v648_v58 = vadd.f32 %v1039_v56, %v504_v10  ;;  %v642_v59 = vpop.f32.mrb[11].mxu1  ;;  %v792_v6 = vmul.f32 %v751_v14, %v680_v54 }
 0x228   :  { %v791_v60 = vmul.f32 %v746_v5, %v679_v55  ;;  %v805_v61 = vadd.f32 %v804_v53, %v790_v52  ;;  %v643_v62 = vadd.f32 %v642_v59, %v499_v4  ;;  %v771_v5 = vpop.permute.xlu1 %770 }
 0x229   :  { %v682_v8 = vmax.f32 %v648_v58, 0.0 }
 0x22a   :  { %v806_v7 = vadd.f32 %v805_v61, %v791_v60  ;;  %v681_v2 = vmax.f32 %v643_v62, 0.0  ;;  %v1042_v9 = vpop.f32.mrb[12].mxu1 }
 0x22b   :  { %v658_v1 = vadd.f32 %v1042_v9, %v514_v40  ;;  %v652_v11 = vpop.f32.mrb[13].mxu1  ;;  %v794_v15 = vmul.f32 %v761_v46, %v682_v8 }
 0x22c   :  { %v793_v0 = vmul.f32 %v756_v29, %v681_v2  ;;  %v807_v3 = vadd.f32 %v806_v7, %v792_v6  ;;  %v653_v12 = vadd.f32 %v652_v11, %v509_v24  ;;  %v781_v24 = vpop.permute.xlu1 %780 }
 0x22d   :  { %v684_v17 = vmax.f32 %v658_v1, 0.0 }
 0x22e   :  { %v808_v16 = vadd.f32 %v807_v3, %v793_v0  ;;  %v683_v10 = vmax.f32 %v653_v12, 0.0  ;;  %v1045_v18 = vpop.f32.mrb[14].mxu1 }
 0x22f   :  { %v668_v19 = vadd.f32 %v1045_v18, %v524_v13  ;;  %v662_v4 = vpop.f32.mrb[15].mxu1  ;;  %v796_v22 = vmul.f32 %v771_v5, %v684_v17 }
 0x230   :  { %v795_v20 = vmul.f32 %v766_v63, %v683_v10  ;;  %v809_v14 = vadd.f32 %v808_v16, %v794_v15  ;;  %v663_v21 = vadd.f32 %v662_v4, %v519_v57 }
 0x231   :  { %v686_v25 = vmax.f32 %v668_v19, 0.0 }
 0x232   :  { %v810_v23 = vadd.f32 %v809_v14, %v795_v20  ;;  %v685_v26 = vmax.f32 %v663_v21, 0.0 }
 0x233   :  { %v798_v30 = vmul.f32 %v781_v24, %v686_v25 }
 0x234   :  { %v797_v28 = vmul.f32 %v776_v27, %v685_v26  ;;  %v811_v29 = vadd.f32 %v810_v23, %v796_v22 }
 0x236   :  { %v812_v31 = vadd.f32 %v811_v29, %v797_v28 }
 0x238   :  { %v813_v32 = vadd.f32 %v812_v31, %v798_v30 }
 0x23a   :  { %v814_v33 = vrot.slane %v813_v32, 4 }
 0x23c   :  { %v815_v34 = vadd.f32 %v814_v33, %v813_v32 }
 0x23e   :  { %v816_v35 = vrot.slane %v815_v34, 2 }
 0x240   :  { %v817_v36 = vadd.f32 %v816_v35, %v815_v34 }
 0x242   :  { %v818_v37 = vrot.slane %v817_v36, 1 }
 0x244   :  { %v819_v39 = vadd.f32 %v818_v37, %v817_v36 }
 0x246   :  { %v822_v40 = vadd.f32 %v821_v38, %v819_v39 }
 0x248   :  { %823 = vst [vmem:[#allocation3] sm:$0x1] %v822_v40 }
 0x249   :  { %1141 = shalt.err (!%p1138_p4)
}
 0x24a   :  { %s1142_s22 = scalar_lea.hbm %s1560_s7, 16 }
 0x24b   :  { %p1143_p5 = scmp.ne.s32.totalorder %s1560_s7, %s1142_s22  ;;  %p1146_p6 = scmp.lt.u32.totalorder %s1142_s22, %s1560_s7 }
 0x24d   :  { %p1148_p7 = pnand %p1146_p6, %p1143_p5 }
 0x24f   :  { %1151 = shalt.err (!%p1148_p7)
}
 0x250   :  { %833 = dma.vmem_to_hbm [thread:$0]  %s831_s18, 16, %s1560_s7, [#allocation4]  }
 0x251   :  { %1152 = dma.done.wait [#allocation4], 16  }
 0x252   :  { %1153 = vsyncadd [#allocation4], 4294967280 }
 0x253   :  { %837 = vsyncpa [#allocation4], 1 }

</bundles_post_ra>
